<compile_context>
chip_gen: v6e
topology: v6e:2x2x1
jax: 0.10.0
libtpu: 0.0.40
codegen_flags: <defaults>
</compile_context>

<pallas_src>
import jax
import jax.numpy as jnp
from jax.experimental import pallas as pl
from jax.experimental.pallas import tpu as pltpu


def decoder_kernel(z_ref, w1_ref, b1_ref, w2_ref, b2_ref, out_ref):
    # Layer 1: bf16 x bf16 on the MXU, f32 accumulate; bias + Tanh in f32.
    z_bf = z_ref[...].astype(jnp.bfloat16)  # in-kernel cast, no extra HBM pass
    h = jnp.dot(z_bf, w1_ref[...], preferred_element_type=jnp.float32)
    h = jnp.tanh(h + b1_ref[...])
    # Layer 2: cast activations to bf16 for the MXU, accumulate in f32.
    y = jnp.dot(h.astype(jnp.bfloat16), w2_ref[...],
                preferred_element_type=jnp.float32)
    y = y + b2_ref[...]
    # Sigmoid via a single EUP tanh: sigmoid(y) == 0.5 * (tanh(0.5*y) + 1).
    out_ref[...] = 0.5 * (jnp.tanh(0.5 * y) + 1.0)


def decoder_forward(z, w1_bf, b1, w2_bf, b2, *, batch_tile=1024):
    """Fused MLP decoder. z: [B, z_dim] (f32) -> [B, x_dim] (f32).

    w1_bf / w2_bf should already be bf16 (cast once at init/load); biases f32.
    """
    batch, z_dim = z.shape
    hidden_dim = w1_bf.shape[1]
    x_dim = w2_bf.shape[1]

    b1_f32 = b1.astype(jnp.float32)
    b2_f32 = b2.astype(jnp.float32)

    if batch <= batch_tile:
        # Small batch: single shot, no grid, no pipeline / double-buffering.
        vmem = pl.BlockSpec(memory_space=pltpu.MemorySpace.VMEM)
        return pl.pallas_call(
            decoder_kernel,
            out_shape=jax.ShapeDtypeStruct((batch, x_dim), jnp.float32),
            in_specs=[vmem, vmem, vmem, vmem, vmem],
            out_specs=vmem,
        )(z, w1_bf, b1_f32, w2_bf, b2_f32)

    # Large batch: tile M (ragged last block allowed — no pad, no output slice),
    # keep the small weight set resident in VMEM via constant index_maps, and
    # mark the batch axis "parallel" so megacore / v7x dual-TC split it.
    grid = (pl.cdiv(batch, batch_tile),)
    return pl.pallas_call(
        decoder_kernel,
        out_shape=jax.ShapeDtypeStruct((batch, x_dim), jnp.float32),
        grid=grid,
        in_specs=[
            pl.BlockSpec((batch_tile, z_dim), lambda i: (i, 0)),
            pl.BlockSpec((z_dim, hidden_dim), lambda i: (0, 0)),
            pl.BlockSpec((1, hidden_dim), lambda i: (0, 0)),
            pl.BlockSpec((hidden_dim, x_dim), lambda i: (0, 0)),
            pl.BlockSpec((1, x_dim), lambda i: (0, 0)),
        ],
        out_specs=pl.BlockSpec((batch_tile, x_dim), lambda i: (i, 0)),
        compiler_params=pltpu.CompilerParams(
            dimension_semantics=("parallel",)
        ),
    )(z, w1_bf, b1_f32, w2_bf, b2_f32)


def init_decoder_params(key, z_dim, hidden_dim, x_dim):
    """Deterministic synthetic init mimicking nn.Linear's U(-1/sqrt(in), 1/sqrt(in))."""
    k1, k2, k3, k4 = jax.random.split(key, 4)
    lim1 = 1.0 / jnp.sqrt(jnp.float32(z_dim))
    lim2 = 1.0 / jnp.sqrt(jnp.float32(hidden_dim))
    # Stored as [in, out] (transposed vs. PyTorch's [out, in]).
    w1 = jax.random.uniform(k1, (z_dim, hidden_dim), jnp.float32, -lim1, lim1)
    b1 = jax.random.uniform(k2, (1, hidden_dim), jnp.float32, -lim1, lim1)
    w2 = jax.random.uniform(k3, (hidden_dim, x_dim), jnp.float32, -lim2, lim2)
    b2 = jax.random.uniform(k4, (1, x_dim), jnp.float32, -lim2, lim2)
    return w1, b1, w2, b2


def decoder_ref_f32(z, w1, b1, w2, b2):
    """Pure-f32 JAX reference of the same forward pass (module semantics)."""
    h = jnp.tanh(z @ w1 + b1)
    return jax.nn.sigmoid(h @ w2 + b2)


def decoder_ref_bf16(z, w1, b1, w2, b2):
    """JAX reference matching the kernel's bf16-weight / f32-accumulate math."""
    h = jnp.dot(z.astype(jnp.bfloat16), w1.astype(jnp.bfloat16),
                preferred_element_type=jnp.float32)
    h = jnp.tanh(h + b1)
    y = jnp.dot(h.astype(jnp.bfloat16), w2.astype(jnp.bfloat16),
                preferred_element_type=jnp.float32)
    return jax.nn.sigmoid(y + b2)


if __name__ == "__main__":
    # Small shapes consistent with the module: returns [batch, 784].
    batch, z_dim, hidden_dim, x_dim = 8, 20, 128, 784

    key = jax.random.PRNGKey(0)
    kz, kp = jax.random.split(key)
    z = jax.random.normal(kz, (batch, z_dim), jnp.float32)
    w1, b1, w2, b2 = init_decoder_params(kp, z_dim, hidden_dim, x_dim)

    # Cast weights to bf16 ONCE (load-time), outside the per-call path.
    w1_bf = w1.astype(jnp.bfloat16)
    w2_bf = w2.astype(jnp.bfloat16)

    # Small-batch (gridless) path.
    out = jax.block_until_ready(decoder_forward(z, w1_bf, b1, w2_bf, b2))
    assert out.shape == (batch, x_dim), out.shape

    ref_bf16 = decoder_ref_bf16(z, w1, b1, w2, b2)
    ref_f32 = decoder_ref_f32(z, w1, b1, w2, b2)
    # Check vs. a reference using the same bf16-weight / f32-acc math.
    assert jnp.allclose(out, ref_bf16, atol=5e-3), float(
        jnp.max(jnp.abs(out - ref_bf16)))
    # Loose check vs. the pure-f32 module semantics (bf16 weight quantization).
    assert jnp.allclose(out, ref_f32, atol=2e-2), float(
        jnp.max(jnp.abs(out - ref_f32)))

    # Exercise the batch-tiled grid path, including a ragged last block
    # (300 = 2*128 + 44 -> no pad, no output slice copy).
    big_batch = 300
    zb = jax.random.normal(kz, (big_batch, z_dim), jnp.float32)
    out_b = jax.block_until_ready(
        decoder_forward(zb, w1_bf, b1, w2_bf, b2, batch_tile=128))
    assert out_b.shape == (big_batch, x_dim), out_b.shape
    ref_b = decoder_ref_bf16(zb, w1, b1, w2, b2)
    assert jnp.allclose(out_b, ref_b, atol=5e-3), float(
        jnp.max(jnp.abs(out_b - ref_b)))
    ref_b_f32 = decoder_ref_f32(zb, w1, b1, w2, b2)
    assert jnp.allclose(out_b, ref_b_f32, atol=2e-2), float(
        jnp.max(jnp.abs(out_b - ref_b_f32)))

    print("KERNEL_OK")
</pallas_src>

<mosaic_0001>
module attributes {stable_mosaic.version = 11 : i64} {
  func.func @decoder_kernel(%arg0: memref<8x20xf32, #tpu.memory_space<vmem>>, %arg1: memref<20x128xbf16, #tpu.memory_space<vmem>>, %arg2: memref<1x128xf32, #tpu.memory_space<vmem>>, %arg3: memref<128x784xbf16, #tpu.memory_space<vmem>>, %arg4: memref<1x784xf32, #tpu.memory_space<vmem>>, %arg5: memref<8x784xf32, #tpu.memory_space<vmem>>) attributes {dimension_semantics = [], scalar_prefetch = 0 : i64, scratch_operands = 0 : i64, tpu.core_type = #tpu.core_type<tc>} {
    %c0 = arith.constant 0 : index
    %c0_0 = arith.constant 0 : index
    %0 = vector.load %arg0[%c0, %c0_0] : memref<8x20xf32, #tpu.memory_space<vmem>>, vector<8x20xf32>
    %1 = arith.truncf %0 : vector<8x20xf32> to vector<8x20xbf16>
    %c0_1 = arith.constant 0 : index
    %c0_2 = arith.constant 0 : index
    %2 = vector.load %arg1[%c0_1, %c0_2] : memref<20x128xbf16, #tpu.memory_space<vmem>>, vector<20x128xbf16>
    %cst = arith.constant dense<0.000000e+00> : vector<8x128xf32>
    %3 = tpu.matmul %1, %2, %cst {dimension_numbers = #tpu.dot_dimension_numbers<[1], [0], [0], [1], [0, 0, 1, 1], [], []>} : vector<8x20xbf16>, vector<20x128xbf16>, vector<8x128xf32> -> vector<8x128xf32>
    %c0_3 = arith.constant 0 : index
    %c0_4 = arith.constant 0 : index
    %4 = vector.load %arg2[%c0_3, %c0_4] : memref<1x128xf32, #tpu.memory_space<vmem>>, vector<1x128xf32>
    %5 = vector.broadcast %4 : vector<1x128xf32> to vector<8x128xf32>
    %6 = arith.addf %3, %5 : vector<8x128xf32>
    %7 = math.tanh %6 : vector<8x128xf32>
    %8 = arith.truncf %7 : vector<8x128xf32> to vector<8x128xbf16>
    %c0_5 = arith.constant 0 : index
    %c0_6 = arith.constant 0 : index
    %9 = vector.load %arg3[%c0_5, %c0_6] : memref<128x784xbf16, #tpu.memory_space<vmem>>, vector<128x784xbf16>
    %cst_7 = arith.constant dense<0.000000e+00> : vector<8x784xf32>
    %10 = tpu.matmul %8, %9, %cst_7 {dimension_numbers = #tpu.dot_dimension_numbers<[1], [0], [0], [1], [0, 0, 1, 1], [], []>} : vector<8x128xbf16>, vector<128x784xbf16>, vector<8x784xf32> -> vector<8x784xf32>
    %c0_8 = arith.constant 0 : index
    %c0_9 = arith.constant 0 : index
    %11 = vector.load %arg4[%c0_8, %c0_9] : memref<1x784xf32, #tpu.memory_space<vmem>>, vector<1x784xf32>
    %12 = vector.broadcast %11 : vector<1x784xf32> to vector<8x784xf32>
    %13 = arith.addf %10, %12 : vector<8x784xf32>
    %cst_10 = arith.constant 5.000000e-01 : f32
    %14 = vector.broadcast %cst_10 : f32 to vector<8x784xf32>
    %15 = arith.mulf %14, %13 : vector<8x784xf32>
    %16 = math.tanh %15 : vector<8x784xf32>
    %cst_11 = arith.constant 1.000000e+00 : f32
    %17 = vector.broadcast %cst_11 : f32 to vector<8x784xf32>
    %18 = arith.addf %16, %17 : vector<8x784xf32>
    %cst_12 = arith.constant 5.000000e-01 : f32
    %19 = vector.broadcast %cst_12 : f32 to vector<8x784xf32>
    %20 = arith.mulf %19, %18 : vector<8x784xf32>
    %c0_13 = arith.constant 0 : index
    %c0_14 = arith.constant 0 : index
    %21 = vector.load %arg5[%c0_13, %c0_14] : memref<8x784xf32, #tpu.memory_space<vmem>>, vector<8x784xf32>
    tpu.vector_store %arg5[%c0_13, %c0_14], %20 {strides = array<i32>} : memref<8x784xf32, #tpu.memory_space<vmem>>, vector<8x784xf32>,
    return
  }
}

</mosaic_0001>

<bundles_post_ra>
// kernel: tpu_custom_call.1
= control target key start
LH: loop header
LB: loop body
LE: loop exit
PB: predicated region body
PF: predicated region fallthrough
CT: control target
= control target key end

     0   :  { %v919_v1 = vmov 0.0   ;;  %vm47_vm0 = vcmask 1041408   ;;  %vm920_vm1 = vmmov 0   ;;  %vm43_vm2 = vcmask 162816   ;;  %s1153_s0 = inlined_call_operand.vmem [shape: f32[8,20], index: 0, kind: input, shape index: {}]   ;;  %s1154_s1 = inlined_call_operand.vmem [shape: bf16[20,128], index: 1, kind: input, shape index: {}]   ;;  %s1155_s2 = inlined_call_operand.vmem [shape: f32[1,128], index: 2, kind: input, shape index: {}]   ;;  %s1156_s3 = inlined_call_operand.vmem [shape: bf16[128,784], index: 3, kind: input, shape index: {}]   ;;  %s1157_s4 = inlined_call_operand.vmem [shape: f32[1,784], index: 4, kind: input, shape index: {}]   ;;  %s1158_s5 = inlined_call_operand.hbm [shape: f32[8,784], index: 5, kind: output, shape index: {}]  }
   0x1   :  { %v799_v0 = vld [vmem:[%s1154_s1 + $0x8] ss:$0 sps:$4 sm:$0x33]   ;;  %767 = vmatprep.subr.bf16.mxu0 %v919_v1  ;;  %v800_v2 = vld [vmem:[%s1154_s1] sm:$0xff]   ;;  %771 = vmatprep.mubr.msk.bf16.mxu0 %vm920_vm1, %v919_v1  ;;  %v805_v6 = vld [vmem:[%s1156_s3 + $0x194] ss:$28 sps:$4 sm:$0xff]  }
   0x2   :  { %v49_v3 = vsel %vm47_vm0, %v799_v0, 0  ;;  %v22_v4 = vld [vmem:[%s1153_s0] sm:$0xff]  ;;  %v801_v5 = vld [vmem:[%s1156_s3 + $0x18c] ss:$28 sps:$4 sm:$0xff]   ;;  %v807_v8 = vld [vmem:[%s1156_s3 + $0x154] ss:$28 sps:$4 sm:$0xff]  }
   0x3   :  { %768 = vmatpush3.bf16.msra.mxu0 %v49_v3  ;;  %v806_v7 = vld [vmem:[%s1156_s3 + $0x188] ss:$28 sps:$4 sm:$0xff]   ;;  %482 = vmatprep.subr.bf16.mxu1 %v801_v5  ;;  %v23_v9 = vpack.c.bf16 %v22_v4, %v22_v4  ;;  %v803_v10 = vld [vmem:[%s1156_s3 + $0x190] ss:$28 sps:$4 sm:$0xff]   ;;  %v811_v11 = vld [vmem:[%s1156_s3 + $0x15c] ss:$28 sps:$4 sm:$0xff]  }
   0x4   :  { %769 = vmatprep.subr.bf16.mxu0 %v919_v1  ;;  %483 = vmatpush1.bf16.msra.mxu1 %v806_v7  ;;  %v812_v12 = vld [vmem:[%s1156_s3 + $0x150] ss:$28 sps:$4 sm:$0xff]   ;;  %v813_v13 = vld [vmem:[%s1156_s3 + $0x11c] ss:$28 sps:$4 sm:$0xff]   ;;  %v819_v16 = vld [vmem:[%s1156_s3 + $0xe4] ss:$28 sps:$4 sm:$0xff]  }
   0x5   :  { %484 = vmatprep.subr.bf16.mxu1 %v807_v8  ;;  %v809_v14 = vld [vmem:[%s1156_s3 + $0x158] ss:$28 sps:$4 sm:$0xff]   ;;  %v817_v17 = vld [vmem:[%s1156_s3 + $0x124] ss:$28 sps:$4 sm:$0xff]   ;;  %v823_v20 = vld [vmem:[%s1156_s3 + $0xec] ss:$28 sps:$4 sm:$0xff]  }
   0x6   :  { %v818_v15 = vld [vmem:[%s1156_s3 + $0x118] ss:$28 sps:$4 sm:$0xff]   ;;  %v815_v18 = vld [vmem:[%s1156_s3 + $0x120] ss:$28 sps:$4 sm:$0xff]   ;;  %v821_v21 = vld [vmem:[%s1156_s3 + $0xe8] ss:$28 sps:$4 sm:$0xff]  }
   0x7   :  { %770 = vmatpush3.bf16.msra.mxu0 %v800_v2  ;;  %v824_v19 = vld [vmem:[%s1156_s3 + $0xe0] ss:$28 sps:$4 sm:$0xff]  }
   0x8   :  { %523 = vmatprep.subr.bf16.mxu0 %v805_v6  ;;  %485 = vmatpush1.bf16.msra.mxu1 %v812_v12 }
   0x9   :  { %486 = vmatprep.subr.bf16.mxu1 %v813_v13 }
   0xa   :  { %772 = vmatmul.mubr.msk.bf16.vlgmr.msra.gmra.mxu0 %vm43_vm2, %v23_v9 }
   0xb   :  { %524 = vmatpush1.bf16.msra.mxu0 %v803_v10 }
   0xc   :  { %525 = vmatprep.subr.bf16.mxu0 %v811_v11  ;;  %487 = vmatpush1.bf16.msra.mxu1 %v818_v15 }
   0xd   :  { %488 = vmatprep.subr.bf16.mxu1 %v819_v16 }
   0xf   :  { %526 = vmatpush1.bf16.msra.mxu0 %v809_v14 }
  0x10   :  { %527 = vmatprep.subr.bf16.mxu0 %v817_v17  ;;  %489 = vmatpush1.bf16.msra.mxu1 %v824_v19 }
  0x13   :  { %528 = vmatpush1.bf16.msra.mxu0 %v815_v18 }
  0x14   :  { %529 = vmatprep.subr.bf16.mxu0 %v823_v20 }
  0x17   :  { %530 = vmatpush1.bf16.msra.mxu0 %v821_v21 }
  0x18   :  { %10 = vsyncpa [#allocation3], 0  ;;  %v825_v22 = vld [vmem:[%s1156_s3 + $0xac] ss:$28 sps:$4 sm:$0xff]   ;;  %v829_v23 = vld [vmem:[%s1156_s3 + $0xb4] ss:$28 sps:$4 sm:$0xff]   ;;  %v159_v8 = vlaneseq }
  0x19   :  { %v827_v24 = vld [vmem:[%s1156_s3 + $0xb0] ss:$28 sps:$4 sm:$0xff]   ;;  %v830_v25 = vld [vmem:[%s1156_s3 + $0xa8] ss:$28 sps:$4 sm:$0xff]   ;;  %490 = vmatprep.subr.bf16.mxu1 %v825_v22  ;;  %531 = vmatprep.subr.bf16.mxu0 %v829_v23  ;;  %v835_v27 = vld [vmem:[%s1156_s3 + $0x7c] ss:$28 sps:$4 sm:$0xff]  }
  0x1a   :  { %491 = vmatpush1.bf16.msra.mxu1 %v830_v25  ;;  %v831_v26 = vld [vmem:[%s1156_s3 + $0x74] ss:$28 sps:$4 sm:$0xff]   ;;  %v837_v30 = vld [vmem:[%s1156_s3 + $0x3c] ss:$28 sps:$4 sm:$0xff]   ;;  %v841_v31 = vld [vmem:[%s1156_s3 + $0x44] ss:$28 sps:$4 sm:$0xff]  }
  0x1b   :  { %532 = vmatpush1.bf16.msra.mxu0 %v827_v24  ;;  %v833_v28 = vld [vmem:[%s1156_s3 + $0x78] ss:$28 sps:$4 sm:$0xff]   ;;  %v836_v29 = vld [vmem:[%s1156_s3 + $0x70] ss:$28 sps:$4 sm:$0xff]   ;;  %492 = vmatprep.subr.bf16.mxu1 %v831_v26  ;;  %v839_v32 = vld [vmem:[%s1156_s3 + $0x40] ss:$28 sps:$4 sm:$0xff]  }
  0x1c   :  { %533 = vmatprep.subr.bf16.mxu0 %v835_v27  ;;  %v842_v33 = vld [vmem:[%s1156_s3 + $0x38] ss:$28 sps:$4 sm:$0xff]   ;;  %v843_v34 = vld [vmem:[%s1156_s3 + $0x4] ss:$28 sps:$4 sm:$0xff]   ;;  %v847_v35 = vld [vmem:[%s1156_s3 + $0xc] ss:$28 sps:$4 sm:$0xff]  }
  0x1d   :  { %v845_v36 = vld [vmem:[%s1156_s3 + $0x8] ss:$28 sps:$4 sm:$0xff]   ;;  %v848_v37 = vld [vmem:[%s1156_s3] ss:$28 sps:$4 sm:$0xff]   ;;  %v921_v39 = vmov 0   ;;  %v160_v9 = vshrl.u32 %v159_v8, 7 }
  0x1e   :  { %493 = vmatpush1.bf16.msra.mxu1 %v836_v29  ;;  %v851_v38 = vld [vmem:[%s1156_s3 + $0x19c] ss:$28 sps:$4 sm:$0xff]   ;;  %514 = vmatprep.mubr.bf16.mxu1 %v921_v39  ;;  %v695_v40 = vld [vmem:[%s1155_s2] ss:$0 sm:$0xff]  ;;  %v856_v52 = vld [vmem:[%s1156_s3 + $0x168] ss:$28 sps:$4 sm:$0xff]  }
  0x1f   :  { %534 = vmatpush1.bf16.msra.mxu0 %v833_v28  ;;  %494 = vmatprep.subr.bf16.mxu1 %v837_v30  ;;  %v849_v47 = vld [vmem:[%s1156_s3 + $0x198] ss:$28 sps:$4 sm:$0xff]   ;;  %v852_v48 = vld [vmem:[%s1156_s3 + $0x1a0] ss:$28 sps:$4 sm:$0xff]   ;;  %v859_v53 = vld [vmem:[%s1156_s3 + $0x12c] ss:$28 sps:$4 sm:$0xff]  }
  0x20   :  { %535 = vmatprep.subr.bf16.mxu0 %v841_v31  ;;  %555 = vmatprep.mubr.bf16.mxu0 %v921_v39  ;;  %v855_v50 = vld [vmem:[%s1156_s3 + $0x164] ss:$28 sps:$4 sm:$0xff]   ;;  %v860_v55 = vld [vmem:[%s1156_s3 + $0x130] ss:$28 sps:$4 sm:$0xff]   ;;  %v864_v58 = vld [vmem:[%s1156_s3 + $0xf8] ss:$28 sps:$4 sm:$0xff]  }
  0x21   :  { %v853_v51 = vld [vmem:[%s1156_s3 + $0x160] ss:$28 sps:$4 sm:$0xff]   ;;  %v857_v54 = vld [vmem:[%s1156_s3 + $0x128] ss:$28 sps:$4 sm:$0xff]   ;;  %v863_v56 = vld [vmem:[%s1156_s3 + $0xf4] ss:$28 sps:$4 sm:$0xff]  }
  0x22   :  { %495 = vmatpush1.bf16.msra.mxu1 %v842_v33  ;;  %v861_v57 = vld [vmem:[%s1156_s3 + $0xf0] ss:$28 sps:$4 sm:$0xff]   ;;  %v867_v59 = vld [vmem:[%s1156_s3 + $0xbc] ss:$28 sps:$4 sm:$0xff]   ;;  %v871_v62 = vld [vmem:[%s1156_s3 + $0x84] ss:$28 sps:$4 sm:$0xff]  }
  0x23   :  { %536 = vmatpush1.bf16.msra.mxu0 %v839_v32  ;;  %496 = vmatprep.subr.bf16.mxu1 %v843_v34  ;;  %v865_v60 = vld [vmem:[%s1156_s3 + $0xb8] ss:$28 sps:$4 sm:$0xff]   ;;  %v868_v61 = vld [vmem:[%s1156_s3 + $0xc0] ss:$28 sps:$4 sm:$0xff]   ;;  %v872_v0 = vld [vmem:[%s1156_s3 + $0x88] ss:$28 sps:$4 sm:$0xff]  }
  0x24   :  { %537 = vmatprep.subr.bf16.mxu0 %v847_v35  ;;  %v869_v63 = vld [vmem:[%s1156_s3 + $0x80] ss:$28 sps:$4 sm:$0xff]   ;;  %v875_v2 = vld [vmem:[%s1156_s3 + $0x4c] ss:$28 sps:$4 sm:$0xff]   ;;  %v879_v5 = vld [vmem:[%s1156_s3 + $0x14] ss:$28 sps:$4 sm:$0xff]  }
  0x25   :  { %v873_v3 = vld [vmem:[%s1156_s3 + $0x48] ss:$28 sps:$4 sm:$0xff]   ;;  %v876_v4 = vld [vmem:[%s1156_s3 + $0x50] ss:$28 sps:$4 sm:$0xff]   ;;  %v880_v7 = vld [vmem:[%s1156_s3 + $0x18] ss:$28 sps:$4 sm:$0xff]  }
  0x26   :  { %497 = vmatpush1.bf16.msra.mxu1 %v848_v37  ;;  %v877_v6 = vld [vmem:[%s1156_s3 + $0x10] ss:$28 sps:$4 sm:$0xff]   ;;  %v161_v10 = vsub.s32 0, %v160_v9  ;;  %v169_v11 = vsub.s32 2, %v160_v9  ;;  %v157_v12 = vld [vmem:[%s1157_s4] sm:$0x7f] }
  0x27   :  { %538 = vmatpush1.bf16.msra.mxu0 %v845_v36  ;;  %564 = vmatprep.subr.bf16.mxu1 %v851_v38  ;;  %v165_v13 = vsub.s32 1, %v160_v9  ;;  %v173_v14 = vsub.s32 3, %v160_v9  ;;  %s922_s3 = smov [#allocation2]   ;;  %vm679_vm3 = vcmask 130048  }
  0x28   :  { %775 = vmatprep.subr.bf16.mxu0 %v919_v1  ;;  %v162_v15 = vrot.slane %v157_v12, %v161_v10  ;;  %v170_v16 = vrot.slane %v157_v12, %v169_v11  ;;  %s687_s4 = sshll.u32 %s922_s3, 4  ;;  %s688_s4 = int_to_ptr.vmem [resolvable:$true] %s687_s4 }
  0x29   :  { %v166_v17 = vrot.slane %v157_v12, %v165_v13  ;;  %v174_v18 = vrot.slane %v157_v12, %v173_v14  ;;  %s897_s0 = scalar_lea.vmem %s688_s4, 896  ;;  %p902_p1 = scmp.lt.s32.totalorder %s688_s4, %s688_s4 }
  0x2a   :  { %p898_p0 = scmp.ne.s32.totalorder %s688_s4, %s897_s0  ;;  %p903_p2 = scmp.lt.s32.totalorder %s897_s0, %s897_s0 }
  0x2c   :  { %p904_p3 = por %p903_p2, %p902_p1 }
  0x2e   :  { %p905_p4 = pnand %p904_p3, %p898_p0 }
  0xca   :  { %v85_v41 = vpop.f32.mrf.mxu0 }
  0xcb   :  { %v86_v42 = vadd.f32 %v695_v40, %v85_v41 }
  0xcc   :  { %v773_v43 = vpop.f32.mrf.mxu0 }
  0xcd   :  { %881 = vtanh.f32 %v86_v42 }
  0xce   :  { %v88_v44 = vpop.f32.mrf.mxu0 }
  0xd0   :  { %v774_v45 = vpop.f32.mrf.mxu0 }
  0xda   :  { %v882_v46 = vpop.eup %881 }
  0xdb   :  { %v92_v49 = vpack.c.bf16 %v882_v46, %v882_v46  ;;  %v177_v46 = vsub.s32 4, %v160_v9 }
  0xdd   :  { %515 = vmatmul.mubr.bf16.vlgmr.msra.gmra.mxu1 %v92_v49  ;;  %556 = vmatmul.mubr.bf16.vlgmr.msra.gmra.mxu0 %v92_v49 }
  0xde   :  { %565 = vmatpush1.bf16.msra.mxu1 %v849_v47  ;;  %776 = vmatpush3.bf16.msra.mxu0 %v852_v48  ;;  %v185_v47 = vsub.s32 6, %v160_v9  ;;  %v181_v48 = vsub.s32 5, %v160_v9 }
  0xdf   :  { %566 = vmatprep.subr.bf16.mxu1 %v855_v50  ;;  %777 = vmatprep.subr.bf16.mxu0 %v919_v1 }
  0xe0   :  { %596 = vmatprep.mubr.bf16.mxu1 %v921_v39  ;;  %791 = vmatprep.mubr.msk.bf16.mxu0 %vm920_vm1, %v919_v1  ;;  %v186_v50 = vrot.slane %v157_v12, %v185_v47 }
  0xe2   :  { %567 = vmatpush1.bf16.msra.mxu1 %v853_v51  ;;  %778 = vmatpush3.bf16.msra.mxu0 %v856_v52  ;;  %v182_v51 = vrot.slane %v157_v12, %v181_v48 }
  0xe3   :  { %568 = vmatprep.subr.bf16.mxu1 %v859_v53  ;;  %779 = vmatprep.subr.bf16.mxu0 %v919_v1 }
  0xe6   :  { %569 = vmatpush1.bf16.msra.mxu1 %v857_v54  ;;  %780 = vmatpush3.bf16.msra.mxu0 %v860_v55 }
  0xe7   :  { %570 = vmatprep.subr.bf16.mxu1 %v863_v56  ;;  %781 = vmatprep.subr.bf16.mxu0 %v919_v1 }
  0xea   :  { %571 = vmatpush1.bf16.msra.mxu1 %v861_v57  ;;  %782 = vmatpush3.bf16.msra.mxu0 %v864_v58 }
  0xeb   :  { %572 = vmatprep.subr.bf16.mxu1 %v867_v59  ;;  %783 = vmatprep.subr.bf16.mxu0 %v919_v1 }
  0xee   :  { %573 = vmatpush1.bf16.msra.mxu1 %v865_v60  ;;  %784 = vmatpush3.bf16.msra.mxu0 %v868_v61 }
  0xef   :  { %574 = vmatprep.subr.bf16.mxu1 %v871_v62  ;;  %785 = vmatprep.subr.bf16.mxu0 %v919_v1 }
  0xf2   :  { %575 = vmatpush1.bf16.msra.mxu1 %v869_v63  ;;  %786 = vmatpush3.bf16.msra.mxu0 %v872_v0 }
  0xf3   :  { %576 = vmatprep.subr.bf16.mxu1 %v875_v2  ;;  %787 = vmatprep.subr.bf16.mxu0 %v919_v1 }
  0xf6   :  { %577 = vmatpush1.bf16.msra.mxu1 %v873_v3  ;;  %788 = vmatpush3.bf16.msra.mxu0 %v876_v4 }
  0xf7   :  { %578 = vmatprep.subr.bf16.mxu1 %v879_v5  ;;  %789 = vmatprep.subr.bf16.mxu0 %v919_v1 }
  0xfa   :  { %579 = vmatpush1.bf16.msra.mxu1 %v877_v6  ;;  %790 = vmatpush3.bf16.msra.mxu0 %v880_v7 }
  0xfd   :  { %597 = vmatmul.mubr.bf16.vlgmr.msra.gmra.mxu1 %v92_v49  ;;  %792 = vmatmul.mubr.bf16.vlgmr.msra.gmra.mxu0 %v92_v49  ;;  %v178_v49 = vrot.slane %v157_v12, %v177_v46 }
 0x19d   :  { %v516_v19 = vpop.f32.mrf.mxu1  ;;  %v557_v1 = vpop.f32.mrf.mxu0 }
 0x19e   :  { %v517_v20 = vadd.f32 %v516_v19, %v162_v15  ;;  %v558_v21 = vadd.f32 %v557_v1, %v170_v16 }
 0x19f   :  { %v518_v22 = vpop.f32.mrf.mxu1  ;;  %v559_v23 = vpop.f32.mrf.mxu0 }
 0x1a0   :  { %v645_v24 = vmul.f32 0.5, %v517_v20  ;;  %v647_v25 = vmul.f32 0.5, %v558_v21  ;;  %v519_v26 = vadd.f32 %v518_v22, %v166_v17  ;;  %v560_v27 = vadd.f32 %v559_v23, %v174_v18 }
 0x1a1   :  { %v520_v28 = vpop.f32.mrf.mxu1  ;;  %v561_v29 = vpop.f32.mrf.mxu0 }
 0x1a2   :  { %883 = vtanh.f32 %v645_v24  ;;  %v646_v30 = vmul.f32 0.5, %v519_v26  ;;  %v648_v31 = vmul.f32 0.5, %v560_v27 }
 0x1a3   :  { %885 = vtanh.f32 %v647_v25  ;;  %v521_v32 = vpop.f32.mrf.mxu1  ;;  %v562_v33 = vpop.f32.mrf.mxu0 }
 0x1a4   :  { %887 = vtanh.f32 %v646_v30 }
 0x1a5   :  { %889 = vtanh.f32 %v648_v31 }
 0x1af   :  { %v884_v34 = vpop.eup %883 }
 0x1b0   :  { %v886_v35 = vpop.eup %885  ;;  %v659_v36 = vadd.f32 1.0, %v884_v34 }
 0x1b1   :  { %v888_v37 = vpop.eup %887  ;;  %v661_v38 = vadd.f32 1.0, %v886_v35 }
 0x1b2   :  { %v890_v39 = vpop.eup %889  ;;  %v666_v40 = vmul.f32 0.5, %v659_v36  ;;  %v660_v41 = vadd.f32 1.0, %v888_v37 }
 0x1b3   :  { %v668_v42 = vmul.f32 0.5, %v661_v38  ;;  %v662_v43 = vadd.f32 1.0, %v890_v39 }
 0x1b4   :  { %673 = vst [vmem:[#allocation2] sm:$0xff] %v666_v40  ;;  %v667_v44 = vmul.f32 0.5, %v660_v41 }
 0x1b5   :  { %675 = vst [vmem:[#allocation2 + $0x10] sm:$0xff] %v668_v42  ;;  %v669_v45 = vmul.f32 0.5, %v662_v43 }
 0x1b6   :  { %674 = vst [vmem:[#allocation2 + $0x8] sm:$0xff] %v667_v44 }
 0x1b7   :  { %676 = vst [vmem:[#allocation2 + $0x18] sm:$0xff] %v669_v45 }
 0x1bd   :  { %v598_v52 = vpop.f32.mrf.mxu1  ;;  %v639_v53 = vpop.f32.mrf.mxu0 }
 0x1be   :  { %v599_v54 = vadd.f32 %v598_v52, %v178_v49  ;;  %v640_v55 = vadd.f32 %v639_v53, %v186_v50 }
 0x1bf   :  { %v600_v56 = vpop.f32.mrf.mxu1  ;;  %v793_v57 = vpop.f32.mrf.mxu0 }
 0x1c0   :  { %v649_v58 = vmul.f32 0.5, %v599_v54  ;;  %v651_v59 = vmul.f32 0.5, %v640_v55  ;;  %v601_v60 = vadd.f32 %v600_v56, %v182_v51 }
 0x1c1   :  { %v602_v61 = vpop.f32.mrf.mxu1  ;;  %v642_v62 = vpop.f32.mrf.mxu0 }
 0x1c2   :  { %891 = vtanh.f32 %v649_v58  ;;  %v650_v63 = vmul.f32 0.5, %v601_v60 }
 0x1c3   :  { %893 = vtanh.f32 %v651_v59  ;;  %v603_v0 = vpop.f32.mrf.mxu1  ;;  %v794_v2 = vpop.f32.mrf.mxu0 }
 0x1c4   :  { %895 = vtanh.f32 %v650_v63 }
 0x1cf   :  { %v892_v3 = vpop.eup %891 }
 0x1d0   :  { %v894_v4 = vpop.eup %893  ;;  %v663_v5 = vadd.f32 1.0, %v892_v3 }
 0x1d1   :  { %v896_v6 = vpop.eup %895  ;;  %v665_v7 = vadd.f32 1.0, %v894_v4 }
 0x1d2   :  { %v670_v8 = vmul.f32 0.5, %v663_v5  ;;  %v664_v9 = vadd.f32 1.0, %v896_v6 }
 0x1d3   :  { %v672_v10 = vmul.f32 0.5, %v665_v7 }
 0x1d4   :  { %677 = vst [vmem:[#allocation2 + $0x20] sm:$0xff] %v670_v8  ;;  %v671_v11 = vmul.f32 0.5, %v664_v9 }
 0x1d5   :  { %680 = vst.msk [vmem:[#allocation2 + $0x30] sm:$0xff] %vm679_vm3, %v672_v10 }
 0x1d6   :  { %678 = vst [vmem:[#allocation2 + $0x28] sm:$0xff] %v671_v11 }
 0x1d7   :  { %908 = shalt.err (!%p905_p4)
}
 0x1d8   :  { %690 = dma.vmem_to_hbm [thread:$0]  %s688_s4, 896, %s1158_s5, [#allocation3]  }
 0x1d9   :  { %917 = dma.done.wait [#allocation3], 896  }
 0x1da   :  { %918 = vsyncadd [#allocation3], 4294966400 }
 0x1db   :  { %694 = vsyncpa [#allocation3], 1 }

</bundles_post_ra>
